<compile_context>
chip_gen: v7x
topology: tpu7x:2x2x1
jax: 0.10.0
libtpu: 0.0.40
codegen_flags: <defaults>
</compile_context>

<pallas_src>
from functools import partial

import jax
import jax.numpy as jnp
from jax.experimental import pallas as pl
from jax.experimental.pallas import tpu as pltpu

STATE_SIZE = 47
ACTION_SIZE = 11
HIDDEN_SIZE = 64      # stands in for config.channels_two
HIDDEN_SIZE_2 = 32    # stands in for config.channels_one
BATCH = 8

PAD = 128             # lane-aligned padded width used for every layer


def _round_up(x, m):
    return ((x + m - 1) // m) * m


def dqn_kernel(x_ref, w_ref, b_ref, o_ref, xpad_ref):
    """x_ref:   (tile_m, 47)      raw activations (compute dtype).
    w_ref:   (3, 128, 128)        zero-padded weights (compute dtype), resident.
    b_ref:   (3, 1, 128)          zero-padded biases (f32), resident.
    o_ref:   (tile_m, 128)        lane-dense output slab (cols 0..10 = Q-values).
    xpad_ref:(tile_m, 128) VMEM scratch used to zero-extend x to 128 lanes.
    """
    in_dtype = x_ref.dtype

    # Zero-extend the 47 real feature lanes to a full 128-lane tile in VMEM.
    # (Re-zeroed every step: the grid axis is "parallel", so no step ordering
    # may be assumed; the extra full-tile vst is free against the HBM stream.)
    xpad_ref[...] = jnp.zeros_like(xpad_ref)
    xpad_ref[:, :STATE_SIZE] = x_ref[...]
    x = xpad_ref[...]

    # fc1 + ReLU  (MXU dot, f32 accumulation; bias add + ReLU on the VPU)
    h1 = jnp.maximum(
        jnp.dot(x, w_ref[0], preferred_element_type=jnp.float32) + b_ref[0],
        0.0)
    h1 = h1.astype(in_dtype)

    # fc3 + ReLU
    h2 = jnp.maximum(
        jnp.dot(h1, w_ref[1], preferred_element_type=jnp.float32) + b_ref[1],
        0.0)
    h2 = h2.astype(in_dtype)

    # output head (no activation), lane-dense unmasked store
    o_ref[...] = (
        jnp.dot(h2, w_ref[2], preferred_element_type=jnp.float32) + b_ref[2]
    ).astype(o_ref.dtype)


def pack_params(w1, b1, w2, b2, w3, b3, *, compute_dtype=jnp.float32):
    """Pack (in,out)-layout weights into one (3,128,128) slab in the compute
    dtype (done ONCE at init, not per call) and biases into a tiny f32
    (3,1,128) slab (kept f32: negligible size, better add precision)."""
    w = jnp.zeros((3, PAD, PAD), jnp.float32)
    w = w.at[0, :STATE_SIZE, :HIDDEN_SIZE].set(w1)
    w = w.at[1, :HIDDEN_SIZE, :HIDDEN_SIZE_2].set(w2)
    w = w.at[2, :HIDDEN_SIZE_2, :ACTION_SIZE].set(w3)

    b = jnp.zeros((3, 1, PAD), jnp.float32)
    b = b.at[0, 0, :HIDDEN_SIZE].set(b1)
    b = b.at[1, 0, :HIDDEN_SIZE_2].set(b2)
    b = b.at[2, 0, :ACTION_SIZE].set(b3)

    return w.astype(compute_dtype), b


@partial(jax.jit, static_argnames=("compute_dtype", "tile_m"))
def dqn_forward(x, w_packed, b_packed, *,
                compute_dtype=jnp.float32, tile_m=1024):
    """x: (B, 47) float. Returns (B, 11) float32 Q-values.

    compute_dtype: jnp.bfloat16 recommended on v6e/v7x (f32 accumulation).
    tile_m: batch rows per grid step; 512-2048 all fit comfortably in VMEM on
    v5e/v6e/v7x.
    """
    B = x.shape[0]
    xin = x.astype(compute_dtype)

    # --- batch padding / tiling (sublane-packing aware) ---
    sub = 16 if compute_dtype == jnp.bfloat16 else 8   # bf16 packs 16 rows/vreg
    Bp = _round_up(max(B, sub), sub)
    tile = min(_round_up(tile_m, sub), Bp)
    if tile == Bp and Bp >= 2 * sub:
        # Ensure >=2 grid steps so both v7x TensorCores get work.
        tile = _round_up(Bp // 2, sub)
    Bp = _round_up(Bp, tile)
    if Bp > B:
        xin = jnp.pad(xin, ((0, Bp - B), (0, 0)))

    grid = (Bp // tile,)
    out = pl.pallas_call(
        dqn_kernel,
        out_shape=jax.ShapeDtypeStruct((Bp, PAD), compute_dtype),
        grid_spec=pltpu.PrefetchScalarGridSpec(
            num_scalar_prefetch=0,
            grid=grid,
            in_specs=[
                # raw activations: blocked along batch, last dim = full 47
                pl.BlockSpec((tile, STATE_SIZE), lambda i: (i, 0)),
                # packed weights: constant index_map -> DMA'd once, resident
                pl.BlockSpec((3, PAD, PAD), lambda i: (0, 0, 0)),
                # packed biases: constant index_map -> DMA'd once, resident
                pl.BlockSpec((3, 1, PAD), lambda i: (0, 0, 0)),
            ],
            out_specs=pl.BlockSpec((tile, PAD), lambda i: (i, 0)),
            scratch_shapes=[pltpu.VMEM((tile, PAD), compute_dtype)],
        ),
        compiler_params=pltpu.CompilerParams(
            dimension_semantics=("parallel",)),
    )(xin, w_packed, b_packed)

    # lane-dense kernel output -> slice back to the real logits (fused by jit)
    return out[:B, :ACTION_SIZE].astype(jnp.float32)


def init_params(key):
    """Deterministic init mimicking nn.Linear's U(-1/sqrt(fan_in), ...).

    Weights are stored (in_features, out_features) so y = x @ W + b.
    """
    def linear(k, fan_in, fan_out):
        kw, kb = jax.random.split(k)
        bound = 1.0 / jnp.sqrt(jnp.float32(fan_in))
        w = jax.random.uniform(kw, (fan_in, fan_out), jnp.float32, -bound, bound)
        b = jax.random.uniform(kb, (fan_out,), jnp.float32, -bound, bound)
        return w, b

    k1, k2, k3 = jax.random.split(key, 3)
    w1, b1 = linear(k1, STATE_SIZE, HIDDEN_SIZE)
    w2, b2 = linear(k2, HIDDEN_SIZE, HIDDEN_SIZE_2)
    w3, b3 = linear(k3, HIDDEN_SIZE_2, ACTION_SIZE)
    return (w1, b1, w2, b2, w3, b3)


if __name__ == "__main__":
    key = jax.random.PRNGKey(0)
    k_params, k_x = jax.random.split(key)

    params = init_params(k_params)
    # torch.tensor(x).float(): inputs are cast to float32 — feed float32 state.
    x = jax.random.normal(k_x, (BATCH, STATE_SIZE), jnp.float32)

    # Pure-JAX reference of the original module's forward.
    w1, b1, w2, b2, w3, b3 = params
    ref = jnp.maximum(x @ w1 + b1, 0.0)
    ref = jnp.maximum(ref @ w2 + b2, 0.0)
    ref = ref @ w3 + b3

    # --- f32 path (exact, default) ---
    w_f32, b_f32 = pack_params(*params, compute_dtype=jnp.float32)
    out = dqn_forward(x, w_f32, b_f32)
    jax.block_until_ready(out)
    assert out.shape == (BATCH, ACTION_SIZE)
    assert jnp.allclose(out, ref, atol=1e-5, rtol=1e-5)

    # --- bf16 operand/IO path (recommended on v6e/v7x); f32 accumulation ---
    w_bf16, b_bf16 = pack_params(*params, compute_dtype=jnp.bfloat16)
    out_bf16 = dqn_forward(x, w_bf16, b_bf16, compute_dtype=jnp.bfloat16)
    jax.block_until_ready(out_bf16)
    assert out_bf16.shape == (BATCH, ACTION_SIZE)
    assert jnp.allclose(out_bf16, ref, atol=5e-2, rtol=5e-2)

    print("KERNEL_OK")
</pallas_src>

<mosaic_0001>
module attributes {stable_mosaic.version = 11 : i64} {
  func.func @dqn_kernel(%arg0: i32, %arg1: memref<8x47xf32, #tpu.memory_space<vmem>>, %arg2: memref<3x128x128xf32, #tpu.memory_space<vmem>>, %arg3: memref<3x1x128xf32, #tpu.memory_space<vmem>>, %arg4: memref<8x128xf32, #tpu.memory_space<vmem>>, %arg5: memref<8x128xf32, #tpu.memory_space<vmem>>) attributes {dimension_semantics = [#tpu.dimension_semantics<parallel>], iteration_bounds = array<i64: 1>, scalar_prefetch = 0 : i64, scratch_operands = 1 : i64, tpu.core_type = #tpu.core_type<tc>, window_params = [{transform_indices = @transform_0, window_bounds = array<i64: 8, 47>}, {pipeline_mode = #tpu.pipeline_mode<synchronous>, transform_indices = @transform_1, window_bounds = array<i64: 3, 128, 128>}, {pipeline_mode = #tpu.pipeline_mode<synchronous>, transform_indices = @transform_2, window_bounds = array<i64: 3, 1, 128>}, {transform_indices = @transform_3, window_bounds = array<i64: 8, 128>}]} {
    %cst = arith.constant 0.000000e+00 : f32
    %0 = vector.broadcast %cst : f32 to vector<8x128xf32>
    %c0 = arith.constant 0 : index
    %c0_0 = arith.constant 0 : index
    %1 = vector.load %arg5[%c0, %c0_0] : memref<8x128xf32, #tpu.memory_space<vmem>>, vector<8x128xf32>
    tpu.vector_store %arg5[%c0, %c0_0], %0 {strides = array<i32>} : memref<8x128xf32, #tpu.memory_space<vmem>>, vector<8x128xf32>,
    %c0_1 = arith.constant 0 : index
    %c0_2 = arith.constant 0 : index
    %2 = vector.load %arg1[%c0_1, %c0_2] : memref<8x47xf32, #tpu.memory_space<vmem>>, vector<8x47xf32>
    %c0_3 = arith.constant 0 : index
    %c0_4 = arith.constant 0 : index
    %3 = vector.load %arg5[%c0_3, %c0_4] : memref<8x128xf32, #tpu.memory_space<vmem>>, vector<8x47xf32>
    tpu.vector_store %arg5[%c0_3, %c0_4], %2 {strides = array<i32>} : memref<8x128xf32, #tpu.memory_space<vmem>>, vector<8x47xf32>,
    %c0_5 = arith.constant 0 : index
    %c0_6 = arith.constant 0 : index
    %4 = vector.load %arg5[%c0_5, %c0_6] : memref<8x128xf32, #tpu.memory_space<vmem>>, vector<8x128xf32>
    %c0_7 = arith.constant 0 : index
    %c0_8 = arith.constant 0 : index
    %c0_9 = arith.constant 0 : index
    %5 = vector.load %arg2[%c0_7, %c0_8, %c0_9] : memref<3x128x128xf32, #tpu.memory_space<vmem>>, vector<1x128x128xf32>
    %6 = vector.shape_cast %5 : vector<1x128x128xf32> to vector<128x128xf32>
    %cst_10 = arith.constant dense<0.000000e+00> : vector<8x128xf32>
    %7 = tpu.matmul %4, %6, %cst_10 {dimension_numbers = #tpu.dot_dimension_numbers<[1], [0], [0], [1], [0, 0, 1, 1], [], []>} : vector<8x128xf32>, vector<128x128xf32>, vector<8x128xf32> -> vector<8x128xf32>
    %c0_11 = arith.constant 0 : index
    %c0_12 = arith.constant 0 : index
    %c0_13 = arith.constant 0 : index
    %8 = vector.load %arg3[%c0_11, %c0_12, %c0_13] : memref<3x1x128xf32, #tpu.memory_space<vmem>>, vector<1x1x128xf32>
    %9 = vector.shape_cast %8 : vector<1x1x128xf32> to vector<1x128xf32>
    %10 = vector.broadcast %9 : vector<1x128xf32> to vector<8x128xf32>
    %11 = arith.addf %7, %10 : vector<8x128xf32>
    %cst_14 = arith.constant 0.000000e+00 : f32
    %12 = vector.broadcast %cst_14 : f32 to vector<8x128xf32>
    %13 = arith.maximumf %11, %12 : vector<8x128xf32>
    %c1 = arith.constant 1 : index
    %c0_15 = arith.constant 0 : index
    %c0_16 = arith.constant 0 : index
    %14 = vector.load %arg2[%c1, %c0_15, %c0_16] : memref<3x128x128xf32, #tpu.memory_space<vmem>>, vector<1x128x128xf32>
    %15 = vector.shape_cast %14 : vector<1x128x128xf32> to vector<128x128xf32>
    %cst_17 = arith.constant dense<0.000000e+00> : vector<8x128xf32>
    %16 = tpu.matmul %13, %15, %cst_17 {dimension_numbers = #tpu.dot_dimension_numbers<[1], [0], [0], [1], [0, 0, 1, 1], [], []>} : vector<8x128xf32>, vector<128x128xf32>, vector<8x128xf32> -> vector<8x128xf32>
    %c1_18 = arith.constant 1 : index
    %c0_19 = arith.constant 0 : index
    %c0_20 = arith.constant 0 : index
    %17 = vector.load %arg3[%c1_18, %c0_19, %c0_20] : memref<3x1x128xf32, #tpu.memory_space<vmem>>, vector<1x1x128xf32>
    %18 = vector.shape_cast %17 : vector<1x1x128xf32> to vector<1x128xf32>
    %19 = vector.broadcast %18 : vector<1x128xf32> to vector<8x128xf32>
    %20 = arith.addf %16, %19 : vector<8x128xf32>
    %cst_21 = arith.constant 0.000000e+00 : f32
    %21 = vector.broadcast %cst_21 : f32 to vector<8x128xf32>
    %22 = arith.maximumf %20, %21 : vector<8x128xf32>
    %c2 = arith.constant 2 : index
    %c0_22 = arith.constant 0 : index
    %c0_23 = arith.constant 0 : index
    %23 = vector.load %arg2[%c2, %c0_22, %c0_23] : memref<3x128x128xf32, #tpu.memory_space<vmem>>, vector<1x128x128xf32>
    %24 = vector.shape_cast %23 : vector<1x128x128xf32> to vector<128x128xf32>
    %cst_24 = arith.constant dense<0.000000e+00> : vector<8x128xf32>
    %25 = tpu.matmul %22, %24, %cst_24 {dimension_numbers = #tpu.dot_dimension_numbers<[1], [0], [0], [1], [0, 0, 1, 1], [], []>} : vector<8x128xf32>, vector<128x128xf32>, vector<8x128xf32> -> vector<8x128xf32>
    %c2_25 = arith.constant 2 : index
    %c0_26 = arith.constant 0 : index
    %c0_27 = arith.constant 0 : index
    %26 = vector.load %arg3[%c2_25, %c0_26, %c0_27] : memref<3x1x128xf32, #tpu.memory_space<vmem>>, vector<1x1x128xf32>
    %27 = vector.shape_cast %26 : vector<1x1x128xf32> to vector<1x128xf32>
    %28 = vector.broadcast %27 : vector<1x128xf32> to vector<8x128xf32>
    %29 = arith.addf %25, %28 : vector<8x128xf32>
    %c0_28 = arith.constant 0 : index
    %c0_29 = arith.constant 0 : index
    %30 = vector.load %arg4[%c0_28, %c0_29] : memref<8x128xf32, #tpu.memory_space<vmem>>, vector<8x128xf32>
    tpu.vector_store %arg4[%c0_28, %c0_29], %29 {strides = array<i32>} : memref<8x128xf32, #tpu.memory_space<vmem>>, vector<8x128xf32>,
    return
  }
  func.func @transform_0(%arg0: i32) -> (i32, i32) {
    %c0_i32 = arith.constant 0 : i32
    %c0_i32_0 = arith.constant 0 : i32
    return %arg0, %c0_i32 : i32, i32
  }
  func.func @transform_1(%arg0: i32) -> (i32, i32, i32) {
    %c0_i32 = arith.constant 0 : i32
    %c0_i32_0 = arith.constant 0 : i32
    %c0_i32_1 = arith.constant 0 : i32
    %c0_i32_2 = arith.constant 0 : i32
    return %c0_i32, %c0_i32_0, %c0_i32_1 : i32, i32, i32
  }
  func.func @transform_2(%arg0: i32) -> (i32, i32, i32) {
    %c0_i32 = arith.constant 0 : i32
    %c0_i32_0 = arith.constant 0 : i32
    %c0_i32_1 = arith.constant 0 : i32
    %c0_i32_2 = arith.constant 0 : i32
    return %c0_i32, %c0_i32_0, %c0_i32_1 : i32, i32, i32
  }
  func.func @transform_3(%arg0: i32) -> (i32, i32) {
    %c0_i32 = arith.constant 0 : i32
    %c0_i32_0 = arith.constant 0 : i32
    return %arg0, %c0_i32 : i32, i32
  }
}

</mosaic_0001>

<bundles_post_ra>
// kernel: dqn_forward.1
= control target key start
LH: loop header
LB: loop body
LE: loop exit
PB: predicated region body
PF: predicated region fallthrough
CT: control target
= control target key end

     0   :  { %8 = vsyncpa [#allocation4], 0  ;;  %s772_s0 = inlined_call_operand.hbm [shape: f32[8,47], index: 0, kind: input, shape index: {}]   ;;  %s773_s1 = inlined_call_operand.hbm [shape: f32[3,128,128], index: 1, kind: input, shape index: {}]   ;;  %s774_s2 = inlined_call_operand.vmem [shape: f32[3,1,128], index: 2, kind: input, shape index: {}]   ;;  %s775_s3 = inlined_call_operand.hbm [shape: f32[8,128], index: 3, kind: output, shape index: {}]  }
   0x1   :  { %9 = vsyncpa [#allocation7], 0 }
   0x2   :  { %10 = vsyncpa [#allocation5], 0  ;;  %s661_s12 = smov [#allocation3]   ;;  %s662_s14 = smov [#allocation6]  }
   0x3   :  { %s17_s13 = sshll.u32 %s661_s12, 4  ;;  %s26_s15 = sshll.u32 %s662_s14, 4  ;;  %s18_s13 = int_to_ptr.vmem [resolvable:$true] %s17_s13  ;;  %s689_s15 = int_to_ptr.vmem [resolvable:$true] %s26_s15 }
   0x4   :  { %s589_s18 = scalar_lea.hbm %s772_s0, 128 }
   0x5   :  { %p590_p0 = scmp.ne.s32.totalorder %s772_s0, %s589_s18  ;;  %p593_p1 = scmp.lt.u32.totalorder %s589_s18, %s772_s0 }
   0x7   :  { %p595_p2 = pnand %p593_p1, %p590_p0 }
   0x9   :  { %598 = shalt.err (!%p595_p2)
}
   0xa   :  { %s599_s23 = scalar_lea.vmem %s18_s13, 128  ;;  %p604_p4 = scmp.lt.s32.totalorder %s18_s13, %s18_s13 }
   0xb   :  { %p600_p3 = scmp.ne.s32.totalorder %s18_s13, %s599_s23  ;;  %p605_p5 = scmp.lt.s32.totalorder %s599_s23, %s599_s23 }
   0xd   :  { %p606_p6 = por %p605_p5, %p604_p4 }
   0xf   :  { %p607_p7 = pnand %p606_p6, %p600_p3 }
  0x11   :  { %610 = shalt.err (!%p607_p7)
}
  0x12   :  { %20 = dma.hbm_to_vmem [thread:$0]  %s772_s0, 128, %s18_s13, [#allocation4]  }
  0x13   :  { %s611_s28 = scalar_lea.hbm %s773_s1, 6144 }
  0x14   :  { %p612_p8 = scmp.ne.s32.totalorder %s773_s1, %s611_s28  ;;  %p615_p9 = scmp.lt.u32.totalorder %s611_s28, %s773_s1 }
  0x16   :  { %p617_p10 = pnand %p615_p9, %p612_p8 }
  0x18   :  { %620 = shalt.err (!%p617_p10)
}
  0x19   :  { %s621_s6 = scalar_lea.vmem %s689_s15, 6144  ;;  %p626_p12 = scmp.lt.s32.totalorder %s689_s15, %s689_s15 }
  0x1a   :  { %p622_p11 = scmp.ne.s32.totalorder %s689_s15, %s621_s6  ;;  %p627_p13 = scmp.lt.s32.totalorder %s621_s6, %s621_s6 }
  0x1c   :  { %p628_p0 = por %p627_p13, %p626_p12 }
  0x1e   :  { %p629_p1 = pnand %p628_p0, %p622_p11 }
  0x20   :  { %632 = shalt.err (!%p629_p1)
}
  0x21   :  { %s663_s0 = smov 128   ;;  %s664_s7 = smov 8  }
  0x22   :  { %32 = dma.hbm_to_vmem [thread:$0]  %s773_s1, 6144, %s689_s15, [#allocation7], %s663_s0, %s663_s0, %s664_s7  }
  0x23   :  { %655 = dma.done.wait [#allocation4], 128  }
  0x24   :  { %656 = vsyncadd [#allocation4], 4294967168 }
  0x25   :  { %657 = dma.done.wait [#allocation7], 6144  }
  0x26   :  { %658 = vsyncadd [#allocation7], 4294961152  ;;  %v665_v0 = vmov 0.0|0.0   ;;  %v666_v1 = vmov 0.0   ;;  %vm667_vm0 = vmmov 0   ;;  %v46_v2 = vld [vmem:[#allocation6] sm:$0xff] }
  0x27   :  { %509 = vmatprep.subr.bf16.mxu0 %v665_v0  ;;  %41 = vst [vmem:[#allocation2] sm:$0xff] %v666_v1  ;;  %436 = vmatprep.mubr.msk.f32.mxu0 %vm667_vm0, %v666_v1  ;;  %v47_v3 = vld [vmem:[#allocation6 + $0x8] sm:$0xff]  ;;  %v48_v4 = vld [vmem:[#allocation6 + $0x10] sm:$0xff]  ;;  %v49_v6 = vld [vmem:[#allocation6 + $0x18] sm:$0xff]  ;;  %vm43_vm1 = vcmask 384000   ;;  %s668_s15 = smov [#allocation8]  }
  0x28   :  { %533 = vmatprep.subr.bf16.mxu1 %v665_v0  ;;  %471 = vmatprep.mubr.msk.f32.mxu1 %vm667_vm0, %v666_v1  ;;  %v510_v5 = vpack.c.bf16 %v47_v3, %v46_v2  ;;  %v513_v7 = vpack.c.bf16 %v49_v6, %v48_v4  ;;  %v50_v8 = vld [vmem:[#allocation6 + $0x20] sm:$0xff]  ;;  %v51_v9 = vld [vmem:[#allocation6 + $0x28] sm:$0xff]  ;;  %v42_v10 = vld [vmem:[#allocation3] sm:$0xff]  ;;  %s338_s16 = sshll.u32 %s668_s15, 4  ;;  %s339_s16 = int_to_ptr.vmem [resolvable:$true] %s338_s16 }
  0x29   :  { %v141_v11 = vld [vmem:[#allocation6 + $0x80] sm:$0xff]  ;;  %44 = vst.msk [vmem:[#allocation2] sm:$0xff] %vm43_vm1, %v42_v10  ;;  %v142_v12 = vld [vmem:[#allocation6 + $0x88] sm:$0xff]  ;;  %v143_v13 = vld [vmem:[#allocation6 + $0x90] sm:$0xff]  ;;  %v516_v15 = vpack.c.bf16 %v51_v9, %v50_v8  ;;  %s633_s17 = scalar_lea.vmem %s339_s16, 128  ;;  %p638_p3 = scmp.lt.s32.totalorder %s339_s16, %s339_s16 }
  0x2a   :  { %511 = vmatpush3.bf16.msra.mxu0 %v510_v5  ;;  %v144_v14 = vld [vmem:[#allocation6 + $0x98] sm:$0xff]  ;;  %v534_v16 = vpack.c.bf16 %v142_v12, %v141_v11  ;;  %v52_v17 = vld [vmem:[#allocation6 + $0x30] sm:$0xff]  ;;  %v145_v20 = vld [vmem:[#allocation6 + $0xa0] sm:$0xff]  ;;  %p634_p2 = scmp.ne.s32.totalorder %s339_s16, %s633_s17  ;;  %p639_p4 = scmp.lt.s32.totalorder %s633_s17, %s633_s17 }
  0x2b   :  { %512 = vmatprep.subr.bf16.mxu0 %v665_v0  ;;  %v53_v18 = vld [vmem:[#allocation6 + $0x38] sm:$0xff]  ;;  %v537_v19 = vpack.c.bf16 %v144_v14, %v143_v13  ;;  %v146_v21 = vld [vmem:[#allocation6 + $0xa8] sm:$0xff]  ;;  %v54_v23 = vld [vmem:[#allocation6 + $0x40] sm:$0xff] }
  0x2c   :  { %535 = vmatpush3.bf16.msra.mxu1 %v534_v16  ;;  %v519_v22 = vpack.c.bf16 %v53_v18, %v52_v17  ;;  %v55_v24 = vld [vmem:[#allocation6 + $0x48] sm:$0xff]  ;;  %v540_v25 = vpack.c.bf16 %v146_v21, %v145_v20  ;;  %v147_v26 = vld [vmem:[#allocation6 + $0xb0] sm:$0xff]  ;;  %v148_v27 = vld [vmem:[#allocation6 + $0xb8] sm:$0xff]  ;;  %p640_p5 = por %p639_p4, %p638_p3 }
  0x2d   :  { %536 = vmatprep.subr.bf16.mxu1 %v665_v0  ;;  %v522_v28 = vpack.c.bf16 %v55_v24, %v54_v23  ;;  %v56_v29 = vld [vmem:[#allocation6 + $0x50] sm:$0xff]  ;;  %v57_v30 = vld [vmem:[#allocation6 + $0x58] sm:$0xff]  ;;  %v543_v31 = vpack.c.bf16 %v148_v27, %v147_v26  ;;  %v149_v32 = vld [vmem:[#allocation6 + $0xc0] sm:$0xff] }
  0x2e   :  { %514 = vmatpush3.bf16.msra.mxu0 %v513_v7  ;;  %v150_v33 = vld [vmem:[#allocation6 + $0xc8] sm:$0xff]  ;;  %v525_v34 = vpack.c.bf16 %v57_v30, %v56_v29  ;;  %v58_v35 = vld [vmem:[#allocation6 + $0x60] sm:$0xff]  ;;  %v151_v38 = vld [vmem:[#allocation6 + $0xd0] sm:$0xff]  ;;  %p641_p6 = pnand %p640_p5, %p634_p2 }
  0x2f   :  { %515 = vmatprep.subr.bf16.mxu0 %v665_v0  ;;  %v59_v36 = vld [vmem:[#allocation6 + $0x68] sm:$0xff]  ;;  %v546_v37 = vpack.c.bf16 %v150_v33, %v149_v32  ;;  %v152_v39 = vld [vmem:[#allocation6 + $0xd8] sm:$0xff]  ;;  %v60_v41 = vld [vmem:[#allocation6 + $0x70] sm:$0xff] }
  0x30   :  { %538 = vmatpush3.bf16.msra.mxu1 %v537_v19  ;;  %v528_v40 = vpack.c.bf16 %v59_v36, %v58_v35  ;;  %v61_v42 = vld [vmem:[#allocation6 + $0x78] sm:$0xff]  ;;  %v549_v43 = vpack.c.bf16 %v152_v39, %v151_v38  ;;  %v153_v44 = vld [vmem:[#allocation6 + $0xe0] sm:$0xff]  ;;  %v154_v45 = vld [vmem:[#allocation6 + $0xe8] sm:$0xff] }
  0x31   :  { %539 = vmatprep.subr.bf16.mxu1 %v665_v0  ;;  %v531_v46 = vpack.c.bf16 %v61_v42, %v60_v41  ;;  %v552_v47 = vpack.c.bf16 %v154_v45, %v153_v44  ;;  %v45_v48 = vld [vmem:[#allocation2] sm:$0xff]  ;;  %v156_v50 = vld [vmem:[#allocation6 + $0xf8] sm:$0xff]  ;;  %v237_v52 = vld [vmem:[#allocation6 + $0x100] sm:$0xff] }
  0x32   :  { %517 = vmatpush3.bf16.msra.mxu0 %v516_v15  ;;  %v155_v49 = vld [vmem:[#allocation6 + $0xf0] sm:$0xff]  ;;  %v238_v53 = vld [vmem:[#allocation6 + $0x108] sm:$0xff]  ;;  %v240_v56 = vld [vmem:[#allocation6 + $0x118] sm:$0xff] }
  0x33   :  { %518 = vmatprep.subr.bf16.mxu0 %v665_v0  ;;  %v555_v51 = vpack.c.bf16 %v156_v50, %v155_v49  ;;  %v239_v54 = vld [vmem:[#allocation6 + $0x110] sm:$0xff]  ;;  %v558_v55 = vpack.c.bf16 %v238_v53, %v237_v52  ;;  %v241_v58 = vld [vmem:[#allocation6 + $0x120] sm:$0xff]  ;;  %v242_v59 = vld [vmem:[#allocation6 + $0x128] sm:$0xff] }
  0x34   :  { %541 = vmatpush3.bf16.msra.mxu1 %v540_v25  ;;  %v561_v57 = vpack.c.bf16 %v240_v56, %v239_v54  ;;  %v564_v60 = vpack.c.bf16 %v242_v59, %v241_v58  ;;  %v243_v61 = vld [vmem:[#allocation6 + $0x130] sm:$0xff]  ;;  %v244_v62 = vld [vmem:[#allocation6 + $0x138] sm:$0xff]  ;;  %v246_v2 = vld [vmem:[#allocation6 + $0x148] sm:$0xff] }
  0x35   :  { %542 = vmatprep.subr.bf16.mxu1 %v665_v0  ;;  %v567_v63 = vpack.c.bf16 %v244_v62, %v243_v61  ;;  %v247_v4 = vld [vmem:[#allocation6 + $0x150] sm:$0xff]  ;;  %v248_v5 = vld [vmem:[#allocation6 + $0x158] sm:$0xff]  ;;  %v249_v7 = vld [vmem:[#allocation6 + $0x160] sm:$0xff] }
  0x36   :  { %520 = vmatpush3.bf16.msra.mxu0 %v519_v22  ;;  %v573_v6 = vpack.c.bf16 %v248_v5, %v247_v4  ;;  %v250_v8 = vld [vmem:[#allocation6 + $0x168] sm:$0xff]  ;;  %v348_v10 = vld [vmem:[%s774_s2] ss:$0 sm:$0xff]  ;;  %v252_v16 = vld [vmem:[#allocation6 + $0x178] sm:$0xff] }
  0x37   :  { %521 = vmatprep.subr.bf16.mxu0 %v665_v0  ;;  %v576_v9 = vpack.c.bf16 %v250_v8, %v249_v7  ;;  %v251_v15 = vld [vmem:[#allocation6 + $0x170] sm:$0xff] }
  0x38   :  { %544 = vmatpush3.bf16.msra.mxu1 %v543_v31  ;;  %v579_v17 = vpack.c.bf16 %v252_v16, %v251_v15  ;;  %v350_v18 = vld [vmem:[%s774_s2 + $0x1] ss:$0 sm:$0xff]  ;;  %v352_v22 = vld [vmem:[%s774_s2 + $0x2] ss:$0 sm:$0xff] }
  0x39   :  { %545 = vmatprep.subr.bf16.mxu1 %v665_v0 }
  0x3a   :  { %523 = vmatpush3.bf16.msra.mxu0 %v522_v28 }
  0x3b   :  { %524 = vmatprep.subr.bf16.mxu0 %v665_v0 }
  0x3c   :  { %547 = vmatpush3.bf16.msra.mxu1 %v546_v37 }
  0x3d   :  { %548 = vmatprep.subr.bf16.mxu1 %v665_v0 }
  0x3e   :  { %526 = vmatpush3.bf16.msra.mxu0 %v525_v34 }
  0x3f   :  { %527 = vmatprep.subr.bf16.mxu0 %v665_v0 }
  0x40   :  { %550 = vmatpush3.bf16.msra.mxu1 %v549_v43 }
  0x41   :  { %551 = vmatprep.subr.bf16.mxu1 %v665_v0 }
  0x42   :  { %529 = vmatpush3.bf16.msra.mxu0 %v528_v40 }
  0x43   :  { %530 = vmatprep.subr.bf16.mxu0 %v665_v0 }
  0x44   :  { %553 = vmatpush3.bf16.msra.mxu1 %v552_v47 }
  0x45   :  { %554 = vmatprep.subr.bf16.mxu1 %v665_v0 }
  0x46   :  { %532 = vmatpush3.bf16.msra.mxu0 %v531_v46 }
  0x47   :  { %557 = vmatprep.subr.bf16.mxu0 %v665_v0 }
  0x48   :  { %556 = vmatpush3.bf16.msra.mxu1 %v555_v51 }
  0x49   :  { %437 = vmatmul.mubr.f32.vlgmr.msra.gmra.mrb[0].mxu0 %v45_v48 }
  0x4a   :  { %506 = vmatprep.mubr.msk.f32.mxu0 %vm667_vm0, %v666_v1  ;;  %559 = vmatpush3.bf16.msra.mxu0 %v558_v55  ;;  %v245_v1 = vld [vmem:[#allocation6 + $0x140] sm:$0xff] }
  0x4b   :  { %560 = vmatprep.subr.bf16.mxu0 %v665_v0  ;;  %v570_v3 = vpack.c.bf16 %v246_v2, %v245_v1 }
  0x4e   :  { %562 = vmatpush3.bf16.msra.mxu0 %v561_v57 }
  0x4f   :  { %563 = vmatprep.subr.bf16.mxu0 %v665_v0 }
  0x52   :  { %565 = vmatpush3.bf16.msra.mxu0 %v564_v60 }
  0x53   :  { %566 = vmatprep.subr.bf16.mxu0 %v665_v0 }
  0x56   :  { %568 = vmatpush3.bf16.msra.mxu0 %v567_v63 }
  0x57   :  { %569 = vmatprep.subr.bf16.mxu0 %v665_v0 }
  0x5a   :  { %571 = vmatpush3.bf16.msra.mxu0 %v570_v3 }
  0x5b   :  { %572 = vmatprep.subr.bf16.mxu0 %v665_v0 }
  0x5e   :  { %574 = vmatpush3.bf16.msra.mxu0 %v573_v6 }
  0x5f   :  { %575 = vmatprep.subr.bf16.mxu0 %v665_v0 }
  0x62   :  { %577 = vmatpush3.bf16.msra.mxu0 %v576_v9 }
  0x63   :  { %578 = vmatprep.subr.bf16.mxu0 %v665_v0 }
  0x66   :  { %580 = vmatpush3.bf16.msra.mxu0 %v579_v17 }
 0x11c   :  { %v135_v11 = vpop.f32.mrb[0].mxu0 }
 0x11d   :  { %v136_v12 = vadd.f32 %v348_v10, %v135_v11  ;;  %v438_v13 = vpop.f32.mrb[1].mxu0 }
 0x11f   :  { %v139_v14 = vmax.f32 %v136_v12, 0.0 }
 0x121   :  { %472 = vmatmul.mubr.f32.vlgmr.msra.gmra.mrb[0].mxu1 %v139_v14 }
 0x1f4   :  { %v231_v19 = vpop.f32.mrb[0].mxu1 }
 0x1f5   :  { %v232_v20 = vadd.f32 %v350_v18, %v231_v19  ;;  %v473_v0 = vpop.f32.mrb[1].mxu1 }
 0x1f7   :  { %v235_v21 = vmax.f32 %v232_v20, 0.0 }
 0x1f9   :  { %507 = vmatmul.mubr.f32.vlgmr.msra.gmra.mrb[2].mxu0 %v235_v21 }
 0x2cc   :  { %v327_v23 = vpop.f32.mrb[2].mxu0 }
 0x2cd   :  { %v328_v24 = vadd.f32 %v352_v22, %v327_v23  ;;  %v508_v25 = vpop.f32.mrb[3].mxu0 }
 0x2cf   :  { %331 = vst [vmem:[#allocation8] sm:$0xff] %v328_v24 }
 0x2d0   :  { %644 = shalt.err (!%p641_p6)
}
 0x2d1   :  { %s645_s20 = scalar_lea.hbm %s775_s3, 128 }
 0x2d2   :  { %p646_p7 = scmp.ne.s32.totalorder %s775_s3, %s645_s20  ;;  %p649_p8 = scmp.lt.u32.totalorder %s645_s20, %s775_s3 }
 0x2d4   :  { %p651_p9 = pnand %p649_p8, %p646_p7 }
 0x2d6   :  { %654 = shalt.err (!%p651_p9)
}
 0x2d7   :  { %341 = dma.vmem_to_hbm [thread:$0]  %s339_s16, 128, %s775_s3, [#allocation5]  }
 0x2d8   :  { %659 = dma.done.wait [#allocation5], 128  }
 0x2d9   :  { %660 = vsyncadd [#allocation5], 4294967168 }
 0x2da   :  { %345 = vsyncpa [#allocation4], 1 }
 0x2db   :  { %346 = vsyncpa [#allocation7], 1 }
 0x2dc   :  { %347 = vsyncpa [#allocation5], 1 }

</bundles_post_ra>
